<compile_context>
chip_gen: v7x
topology: tpu7x:2x2x1
jax: 0.10.0
libtpu: 0.0.40
codegen_flags: <defaults>
</compile_context>

<pallas_src>
import functools

import jax
import jax.numpy as jnp
from jax.experimental import pallas as pl
from jax.experimental.pallas import tpu as pltpu

DROPOUT1 = 0.2
DROPOUT2 = 0.5


def _round_up(n, m):
    return ((n + m - 1) // m) * m


def _hash_bits(shape, seed_u32, rows_u32, salt):
    """Counter-based per-element uint32 hash (lowbias32 finalizer).

    Pure jnp integer ops only (lowers on Mosaic and under interpret mode).
    `rows_u32` is a (tile_b, 1) array of *global* row ids, computed once per
    tile and reused by both dropout layers; the column iota is a compile-time
    constant per layer.
    """
    cols = jax.lax.broadcasted_iota(jnp.int32, shape, 1).astype(jnp.uint32)
    x = rows_u32 * jnp.uint32(0x9E3779B1) + cols            # (tile_b,1) bcast
    x = x + seed_u32 * jnp.uint32(0x85EBCA6B) + jnp.uint32((salt * 0xC2B2AE35) & 0xFFFFFFFF)
    x = x ^ (x >> 16)
    x = x * jnp.uint32(0x7FEB352D)
    x = x ^ (x >> 15)
    x = x * jnp.uint32(0x846CA68B)
    x = x ^ (x >> 16)
    return x


def _dropout_mask_only(h, p, seed_u32, rows_u32, salt):
    """Keep-mask select only. The 1/(1-p) rescale is pre-folded into the next
    layer's weights by prepare_params(training=True)."""
    if p <= 0.0:
        return h
    if p >= 1.0:
        return jnp.zeros_like(h)
    bits = _hash_bits(h.shape, seed_u32, rows_u32, salt)
    thresh = jnp.uint32(min(int(p * 4294967296.0), 0xFFFFFFFF))  # keep iff bits >= thresh
    return jnp.where(bits >= thresh, h, 0.0)


def mlp_dropout_kernel(seed_ref, x_ref, w1_ref, b1_ref, w2_ref, b2_ref,
                       w3_ref, b3_ref, out_ref, *, training, p1, p2, tile_b):
    apply_dropout = training and (p1 > 0.0 or p2 > 0.0)
    if apply_dropout:
        seed_u32 = seed_ref[0].astype(jnp.uint32)
        # Global row ids of this batch tile -> every tile draws a distinct
        # mask.  Computed once, reused for both dropout layers.
        rows_u32 = (jax.lax.broadcasted_iota(jnp.int32, (tile_b, 1), 0)
                    + pl.program_id(0) * tile_b).astype(jnp.uint32)
    else:
        seed_u32 = rows_u32 = None   # PRNG-free kernel in eval mode

    x = x_ref[...]  # bf16 tile, lane-dense

    # ---- layer 1: Linear (bf16 MXU, f32 acc) + ReLU (+ dropout mask) ----
    h1 = jnp.dot(x, w1_ref[...], preferred_element_type=jnp.float32) + b1_ref[...]
    h1 = jnp.maximum(h1, 0.0)
    if apply_dropout:
        h1 = _dropout_mask_only(h1, p1, seed_u32, rows_u32, salt=1)

    # ---- layer 2 ----
    h2 = jnp.dot(h1.astype(jnp.bfloat16), w2_ref[...],
                 preferred_element_type=jnp.float32) + b2_ref[...]
    h2 = jnp.maximum(h2, 0.0)
    if apply_dropout:
        h2 = _dropout_mask_only(h2, p2, seed_u32, rows_u32, salt=2)

    # ---- layer 3: logits ----
    out = jnp.dot(h2.astype(jnp.bfloat16), w3_ref[...],
                  preferred_element_type=jnp.float32) + b3_ref[...]
    out_ref[...] = out.astype(out_ref.dtype)


def prepare_params(params, *, training=True, p1=DROPOUT1, p2=DROPOUT2):
    """One-time conversion (outside the forward hot path).

    PyTorch-style [out, in] f32 weights -> bf16 [in, out], zero-padded so every
    feature dimension is a multiple of 128 (lane-dense loads/stores + full MXU
    columns).  For the training set, the inverted-dropout rescales 1/(1-p1) and
    1/(1-p2) are folded into w2 and w3 respectively.
    """
    w1, b1, w2, b2, w3, b3 = params
    num_inputs = w1.shape[1]
    h1, h2, num_outputs = w1.shape[0], w2.shape[0], w3.shape[0]
    inp = _round_up(num_inputs, 128)
    h1p = _round_up(h1, 128)
    h2p = _round_up(h2, 128)
    outp = _round_up(num_outputs, 128)

    s1 = (1.0 / (1.0 - p1)) if (training and 0.0 < p1 < 1.0) else 1.0
    s2 = (1.0 / (1.0 - p2)) if (training and 0.0 < p2 < 1.0) else 1.0

    def pad2(a, rows, cols):
        return jnp.pad(a, ((0, rows - a.shape[0]), (0, cols - a.shape[1])))

    w1t = pad2(w1.T.astype(jnp.float32), inp, h1p).astype(jnp.bfloat16)
    w2t = pad2(w2.T.astype(jnp.float32) * s1, h1p, h2p).astype(jnp.bfloat16)
    w3t = pad2(w3.T.astype(jnp.float32) * s2, h2p, outp).astype(jnp.bfloat16)
    b1r = jnp.pad(b1.astype(jnp.float32), (0, h1p - h1)).reshape(1, h1p)
    b2r = jnp.pad(b2.astype(jnp.float32), (0, h2p - h2)).reshape(1, h2p)
    b3r = jnp.pad(b3.astype(jnp.float32), (0, outp - num_outputs)).reshape(1, outp)

    meta = dict(num_inputs=num_inputs, num_outputs=num_outputs,
                padded_inputs=inp, padded_outputs=outp)
    return (w1t, b1r, w2t, b2r, w3t, b3r), meta


def net_forward(x, prepared, meta, seed, *, training=True, max_tile_rows=1024,
                out_dtype=jnp.float32):
    """Forward pass of Net using a batch-tiled Pallas kernel.

    NOTE: dropout masks are fully determined by (seed, global row, col, salt);
    pass a fresh `seed` every training step.
    """
    w1t, b1r, w2t, b2r, w3t, b3r = prepared
    num_inputs = meta["num_inputs"]
    num_outputs = meta["num_outputs"]
    inp = meta["padded_inputs"]
    outp = meta["padded_outputs"]
    h1p = w1t.shape[1]
    h2p = w2t.shape[1]

    x2d = x.reshape(-1, num_inputs)
    batch = x2d.shape[0]

    # Batch tiling: rows a multiple of 8 sublanes, tiles as large as possible
    # (amortize ~0.35 us per grid step), and always >= 2 tiles so the
    # "parallel" batch axis keeps both v7x TensorCores busy.
    tile_b = min(max(_round_up(-(-batch // 2), 8), 8), max_tile_rows)
    padded_b = max(_round_up(batch, tile_b), 2 * tile_b)
    n_tiles = padded_b // tile_b

    # One pad handles batch rows and lane-dense input columns together.
    x2d = jnp.pad(x2d, ((0, padded_b - batch),
                        (0, inp - num_inputs))).astype(jnp.bfloat16)

    seed_arr = jnp.asarray([seed], dtype=jnp.int32)
    kernel = functools.partial(mlp_dropout_kernel, training=training,
                               p1=DROPOUT1, p2=DROPOUT2, tile_b=tile_b)

    out = pl.pallas_call(
        kernel,
        out_shape=jax.ShapeDtypeStruct((padded_b, outp), out_dtype),
        grid=(n_tiles,),
        in_specs=[
            pl.BlockSpec(memory_space=pltpu.MemorySpace.SMEM),        # seed (scalar)
            pl.BlockSpec((tile_b, inp), lambda i: (i, 0)),            # x tile (pipelined)
            pl.BlockSpec((inp, h1p), lambda i: (0, 0)),               # w1 (VMEM resident)
            pl.BlockSpec((1, h1p), lambda i: (0, 0)),                 # b1
            pl.BlockSpec((h1p, h2p), lambda i: (0, 0)),               # w2
            pl.BlockSpec((1, h2p), lambda i: (0, 0)),                 # b2
            pl.BlockSpec((h2p, outp), lambda i: (0, 0)),              # w3
            pl.BlockSpec((1, outp), lambda i: (0, 0)),                # b3
        ],
        out_specs=pl.BlockSpec((tile_b, outp), lambda i: (i, 0)),     # lane-dense store
        compiler_params=pltpu.CompilerParams(
            dimension_semantics=("parallel",),       # shard batch tiles across TCs
            vmem_limit_bytes=32 * 1024 * 1024,       # > v5e 16 MiB default, < v7x 64 MiB
        ),
    )(seed_arr, x2d, w1t, b1r, w2t, b2r, w3t, b3r)

    # Slice the real rows / logit columns outside the kernel.
    return out[:batch, :num_outputs]


def init_params(key, num_inputs, num_hiddens1, num_hiddens2, num_outputs):
    """Deterministic init mimicking nn.Linear's default U(-1/sqrt(fan_in), +)."""
    def linear(k, fan_in, fan_out):
        kw, kb = jax.random.split(k)
        bound = 1.0 / jnp.sqrt(fan_in)
        w = jax.random.uniform(kw, (fan_out, fan_in), jnp.float32, -bound, bound)
        b = jax.random.uniform(kb, (fan_out,), jnp.float32, -bound, bound)
        return w, b

    k1, k2, k3 = jax.random.split(key, 3)
    w1, b1 = linear(k1, num_inputs, num_hiddens1)
    w2, b2 = linear(k2, num_hiddens1, num_hiddens2)
    w3, b3 = linear(k3, num_hiddens2, num_outputs)
    return (w1, b1, w2, b2, w3, b3)


if __name__ == "__main__":
    # Small shapes consistent with the MLP spec (padded to 128-wide lanes
    # inside prepare_params / net_forward).
    NUM_INPUTS, NUM_H1, NUM_H2, NUM_OUTPUTS = 32, 64, 32, 16
    BATCH = 8

    key = jax.random.PRNGKey(0)
    kx, kp = jax.random.split(key)
    x = jax.random.normal(kx, (BATCH, NUM_INPUTS), dtype=jnp.float32)
    params = init_params(kp, NUM_INPUTS, NUM_H1, NUM_H2, NUM_OUTPUTS)

    prepared_train, meta = prepare_params(params, training=True)
    prepared_eval, _ = prepare_params(params, training=False)

    # Training-mode forward (in-kernel dropout keep-masks; rescale folded into
    # the prepared training weights).
    out_train = jax.block_until_ready(
        net_forward(x, prepared_train, meta, seed=0, training=True))
    assert out_train.shape == (BATCH, NUM_OUTPUTS)
    assert out_train.dtype == jnp.float32
    assert bool(jnp.all(jnp.isfinite(out_train)))

    # Eval-mode forward vs a pure-JAX reference with identical bf16 numerics
    # and identical (padded) weights.
    out_eval = jax.block_until_ready(
        net_forward(x, prepared_eval, meta, seed=0, training=False))
    assert out_eval.shape == (BATCH, NUM_OUTPUTS)

    w1t, b1r, w2t, b2r, w3t, b3r = prepared_eval
    xb = jnp.pad(x, ((0, 0), (0, meta["padded_inputs"] - NUM_INPUTS))).astype(jnp.bfloat16)
    r1 = jnp.maximum(jnp.dot(xb, w1t, preferred_element_type=jnp.float32) + b1r, 0.0)
    r2 = jnp.maximum(jnp.dot(r1.astype(jnp.bfloat16), w2t,
                             preferred_element_type=jnp.float32) + b2r, 0.0)
    ref = (jnp.dot(r2.astype(jnp.bfloat16), w3t,
                   preferred_element_type=jnp.float32) + b3r)[:, :NUM_OUTPUTS]
    assert jnp.allclose(out_eval, ref, atol=2e-2, rtol=2e-2)

    print("KERNEL_OK")
</pallas_src>

<mosaic_0001>
module attributes {stable_mosaic.version = 11 : i64} {
  func.func @mlp_dropout_kernel(%arg0: i32, %arg1: memref<1xi32, #tpu.memory_space<smem>>, %arg2: memref<8x128xbf16, #tpu.memory_space<vmem>>, %arg3: memref<128x128xbf16, #tpu.memory_space<vmem>>, %arg4: memref<1x128xf32, #tpu.memory_space<vmem>>, %arg5: memref<128x128xbf16, #tpu.memory_space<vmem>>, %arg6: memref<1x128xf32, #tpu.memory_space<vmem>>, %arg7: memref<128x128xbf16, #tpu.memory_space<vmem>>, %arg8: memref<1x128xf32, #tpu.memory_space<vmem>>, %arg9: memref<8x128xf32, #tpu.memory_space<vmem>>) attributes {dimension_semantics = [#tpu.dimension_semantics<parallel>], iteration_bounds = array<i64: 2>, scalar_prefetch = 0 : i64, scratch_operands = 0 : i64, tpu.core_type = #tpu.core_type<tc>, window_params = [{transform_indices = @transform_0, window_bounds = array<i64: 1>}, {transform_indices = @transform_1, window_bounds = array<i64: 8, 128>}, {pipeline_mode = #tpu.pipeline_mode<synchronous>, transform_indices = @transform_2, window_bounds = array<i64: 128, 128>}, {pipeline_mode = #tpu.pipeline_mode<synchronous>, transform_indices = @transform_3, window_bounds = array<i64: 1, 128>}, {pipeline_mode = #tpu.pipeline_mode<synchronous>, transform_indices = @transform_4, window_bounds = array<i64: 128, 128>}, {pipeline_mode = #tpu.pipeline_mode<synchronous>, transform_indices = @transform_5, window_bounds = array<i64: 1, 128>}, {pipeline_mode = #tpu.pipeline_mode<synchronous>, transform_indices = @transform_6, window_bounds = array<i64: 128, 128>}, {pipeline_mode = #tpu.pipeline_mode<synchronous>, transform_indices = @transform_7, window_bounds = array<i64: 1, 128>}, {transform_indices = @transform_8, window_bounds = array<i64: 8, 128>}]} {
    %c0 = arith.constant 0 : index
    %0 = memref.load %arg1[%c0] : memref<1xi32, #tpu.memory_space<smem>>
    %1 = tpu.iota {dimensions = array<i32: 0>} : vector<8x1xi32>
    %c8_i32 = arith.constant 8 : i32
    %2 = arith.muli %arg0, %c8_i32 : i32
    %3 = vector.broadcast %2 : i32 to vector<8x1xi32>
    %4 = arith.addi %1, %3 : vector<8x1xi32>
    %c0_0 = arith.constant 0 : index
    %c0_1 = arith.constant 0 : index
    %5 = vector.load %arg2[%c0_0, %c0_1] : memref<8x128xbf16, #tpu.memory_space<vmem>>, vector<8x128xbf16>
    %c0_2 = arith.constant 0 : index
    %c0_3 = arith.constant 0 : index
    %6 = vector.load %arg3[%c0_2, %c0_3] : memref<128x128xbf16, #tpu.memory_space<vmem>>, vector<128x128xbf16>
    %cst = arith.constant dense<0.000000e+00> : vector<8x128xf32>
    %7 = tpu.matmul %5, %6, %cst {dimension_numbers = #tpu.dot_dimension_numbers<[1], [0], [0], [1], [0, 0, 1, 1], [], []>} : vector<8x128xbf16>, vector<128x128xbf16>, vector<8x128xf32> -> vector<8x128xf32>
    %c0_4 = arith.constant 0 : index
    %c0_5 = arith.constant 0 : index
    %8 = vector.load %arg4[%c0_4, %c0_5] : memref<1x128xf32, #tpu.memory_space<vmem>>, vector<1x128xf32>
    %9 = vector.broadcast %8 : vector<1x128xf32> to vector<8x128xf32>
    %10 = arith.addf %7, %9 : vector<8x128xf32>
    %cst_6 = arith.constant 0.000000e+00 : f32
    %11 = vector.broadcast %cst_6 : f32 to vector<8x128xf32>
    %12 = arith.maximumf %10, %11 : vector<8x128xf32>
    %13 = tpu.iota {dimensions = array<i32: 1>} : vector<8x128xi32>
    %c-1640531535_i32 = arith.constant -1640531535 : i32
    %14 = vector.broadcast %c-1640531535_i32 : i32 to vector<8x1xi32>
    %15 = arith.muli %4, %14 : vector<8x1xi32>
    %16 = vector.broadcast %15 : vector<8x1xi32> to vector<8x128xi32>
    %17 = arith.addi %16, %13 : vector<8x128xi32>
    %c-2048144789_i32 = arith.constant -2048144789 : i32
    %18 = arith.muli %0, %c-2048144789_i32 : i32
    %19 = vector.broadcast %18 : i32 to vector<8x128xi32>
    %20 = arith.addi %17, %19 : vector<8x128xi32>
    %c-1028477387_i32 = arith.constant -1028477387 : i32
    %21 = vector.broadcast %c-1028477387_i32 : i32 to vector<8x128xi32>
    %22 = arith.addi %20, %21 : vector<8x128xi32>
    %c16_i32 = arith.constant 16 : i32
    %23 = vector.broadcast %c16_i32 : i32 to vector<8x128xi32>
    %24 = arith.shrui %22, %23 : vector<8x128xi32>
    %25 = arith.xori %22, %24 : vector<8x128xi32>
    %c2146121005_i32 = arith.constant 2146121005 : i32
    %26 = vector.broadcast %c2146121005_i32 : i32 to vector<8x128xi32>
    %27 = arith.muli %25, %26 : vector<8x128xi32>
    %c15_i32 = arith.constant 15 : i32
    %28 = vector.broadcast %c15_i32 : i32 to vector<8x128xi32>
    %29 = arith.shrui %27, %28 : vector<8x128xi32>
    %30 = arith.xori %27, %29 : vector<8x128xi32>
    %c-2073254261_i32 = arith.constant -2073254261 : i32
    %31 = vector.broadcast %c-2073254261_i32 : i32 to vector<8x128xi32>
    %32 = arith.muli %30, %31 : vector<8x128xi32>
    %c16_i32_7 = arith.constant 16 : i32
    %33 = vector.broadcast %c16_i32_7 : i32 to vector<8x128xi32>
    %34 = arith.shrui %32, %33 : vector<8x128xi32>
    %35 = arith.xori %32, %34 : vector<8x128xi32>
    %c858993459_i32 = arith.constant 858993459 : i32
    %36 = vector.broadcast %c858993459_i32 : i32 to vector<8x128xi32>
    %37 = arith.cmpi uge, %35, %36 : vector<8x128xi32>
    %cst_8 = arith.constant 0.000000e+00 : f32
    %38 = vector.broadcast %cst_8 : f32 to vector<8x128xf32>
    %39 = arith.select %37, %12, %38 : vector<8x128xi1>, vector<8x128xf32>
    %40 = arith.truncf %39 : vector<8x128xf32> to vector<8x128xbf16>
    %c0_9 = arith.constant 0 : index
    %c0_10 = arith.constant 0 : index
    %41 = vector.load %arg5[%c0_9, %c0_10] : memref<128x128xbf16, #tpu.memory_space<vmem>>, vector<128x128xbf16>
    %cst_11 = arith.constant dense<0.000000e+00> : vector<8x128xf32>
    %42 = tpu.matmul %40, %41, %cst_11 {dimension_numbers = #tpu.dot_dimension_numbers<[1], [0], [0], [1], [0, 0, 1, 1], [], []>} : vector<8x128xbf16>, vector<128x128xbf16>, vector<8x128xf32> -> vector<8x128xf32>
    %c0_12 = arith.constant 0 : index
    %c0_13 = arith.constant 0 : index
    %43 = vector.load %arg6[%c0_12, %c0_13] : memref<1x128xf32, #tpu.memory_space<vmem>>, vector<1x128xf32>
    %44 = vector.broadcast %43 : vector<1x128xf32> to vector<8x128xf32>
    %45 = arith.addf %42, %44 : vector<8x128xf32>
    %cst_14 = arith.constant 0.000000e+00 : f32
    %46 = vector.broadcast %cst_14 : f32 to vector<8x128xf32>
    %47 = arith.maximumf %45, %46 : vector<8x128xf32>
    %48 = tpu.iota {dimensions = array<i32: 1>} : vector<8x128xi32>
    %c-1640531535_i32_15 = arith.constant -1640531535 : i32
    %49 = vector.broadcast %c-1640531535_i32_15 : i32 to vector<8x1xi32>
    %50 = arith.muli %4, %49 : vector<8x1xi32>
    %51 = vector.broadcast %50 : vector<8x1xi32> to vector<8x128xi32>
    %52 = arith.addi %51, %48 : vector<8x128xi32>
    %c-2048144789_i32_16 = arith.constant -2048144789 : i32
    %53 = arith.muli %0, %c-2048144789_i32_16 : i32
    %54 = vector.broadcast %53 : i32 to vector<8x128xi32>
    %55 = arith.addi %52, %54 : vector<8x128xi32>
    %c-2056954774_i32 = arith.constant -2056954774 : i32
    %56 = vector.broadcast %c-2056954774_i32 : i32 to vector<8x128xi32>
    %57 = arith.addi %55, %56 : vector<8x128xi32>
    %c16_i32_17 = arith.constant 16 : i32
    %58 = vector.broadcast %c16_i32_17 : i32 to vector<8x128xi32>
    %59 = arith.shrui %57, %58 : vector<8x128xi32>
    %60 = arith.xori %57, %59 : vector<8x128xi32>
    %c2146121005_i32_18 = arith.constant 2146121005 : i32
    %61 = vector.broadcast %c2146121005_i32_18 : i32 to vector<8x128xi32>
    %62 = arith.muli %60, %61 : vector<8x128xi32>
    %c15_i32_19 = arith.constant 15 : i32
    %63 = vector.broadcast %c15_i32_19 : i32 to vector<8x128xi32>
    %64 = arith.shrui %62, %63 : vector<8x128xi32>
    %65 = arith.xori %62, %64 : vector<8x128xi32>
    %c-2073254261_i32_20 = arith.constant -2073254261 : i32
    %66 = vector.broadcast %c-2073254261_i32_20 : i32 to vector<8x128xi32>
    %67 = arith.muli %65, %66 : vector<8x128xi32>
    %c16_i32_21 = arith.constant 16 : i32
    %68 = vector.broadcast %c16_i32_21 : i32 to vector<8x128xi32>
    %69 = arith.shrui %67, %68 : vector<8x128xi32>
    %70 = arith.xori %67, %69 : vector<8x128xi32>
    %c-2147483648_i32 = arith.constant -2147483648 : i32
    %71 = vector.broadcast %c-2147483648_i32 : i32 to vector<8x128xi32>
    %72 = arith.cmpi uge, %70, %71 : vector<8x128xi32>
    %cst_22 = arith.constant 0.000000e+00 : f32
    %73 = vector.broadcast %cst_22 : f32 to vector<8x128xf32>
    %74 = arith.select %72, %47, %73 : vector<8x128xi1>, vector<8x128xf32>
    %75 = arith.truncf %74 : vector<8x128xf32> to vector<8x128xbf16>
    %c0_23 = arith.constant 0 : index
    %c0_24 = arith.constant 0 : index
    %76 = vector.load %arg7[%c0_23, %c0_24] : memref<128x128xbf16, #tpu.memory_space<vmem>>, vector<128x128xbf16>
    %cst_25 = arith.constant dense<0.000000e+00> : vector<8x128xf32>
    %77 = tpu.matmul %75, %76, %cst_25 {dimension_numbers = #tpu.dot_dimension_numbers<[1], [0], [0], [1], [0, 0, 1, 1], [], []>} : vector<8x128xbf16>, vector<128x128xbf16>, vector<8x128xf32> -> vector<8x128xf32>
    %c0_26 = arith.constant 0 : index
    %c0_27 = arith.constant 0 : index
    %78 = vector.load %arg8[%c0_26, %c0_27] : memref<1x128xf32, #tpu.memory_space<vmem>>, vector<1x128xf32>
    %79 = vector.broadcast %78 : vector<1x128xf32> to vector<8x128xf32>
    %80 = arith.addf %77, %79 : vector<8x128xf32>
    %c0_28 = arith.constant 0 : index
    %c0_29 = arith.constant 0 : index
    %81 = vector.load %arg9[%c0_28, %c0_29] : memref<8x128xf32, #tpu.memory_space<vmem>>, vector<8x128xf32>
    tpu.vector_store %arg9[%c0_28, %c0_29], %80 {strides = array<i32>} : memref<8x128xf32, #tpu.memory_space<vmem>>, vector<8x128xf32>,
    return
  }
  func.func @transform_0(%arg0: i32) -> i32 {
    %c0_i32 = arith.constant 0 : i32
    %c0_i32_0 = arith.constant 0 : i32
    return %c0_i32 : i32
  }
  func.func @transform_1(%arg0: i32) -> (i32, i32) {
    %c0_i32 = arith.constant 0 : i32
    %c0_i32_0 = arith.constant 0 : i32
    return %arg0, %c0_i32 : i32, i32
  }
  func.func @transform_2(%arg0: i32) -> (i32, i32) {
    %c0_i32 = arith.constant 0 : i32
    %c0_i32_0 = arith.constant 0 : i32
    %c0_i32_1 = arith.constant 0 : i32
    return %c0_i32, %c0_i32_0 : i32, i32
  }
  func.func @transform_3(%arg0: i32) -> (i32, i32) {
    %c0_i32 = arith.constant 0 : i32
    %c0_i32_0 = arith.constant 0 : i32
    %c0_i32_1 = arith.constant 0 : i32
    return %c0_i32, %c0_i32_0 : i32, i32
  }
  func.func @transform_4(%arg0: i32) -> (i32, i32) {
    %c0_i32 = arith.constant 0 : i32
    %c0_i32_0 = arith.constant 0 : i32
    %c0_i32_1 = arith.constant 0 : i32
    return %c0_i32, %c0_i32_0 : i32, i32
  }
  func.func @transform_5(%arg0: i32) -> (i32, i32) {
    %c0_i32 = arith.constant 0 : i32
    %c0_i32_0 = arith.constant 0 : i32
    %c0_i32_1 = arith.constant 0 : i32
    return %c0_i32, %c0_i32_0 : i32, i32
  }
  func.func @transform_6(%arg0: i32) -> (i32, i32) {
    %c0_i32 = arith.constant 0 : i32
    %c0_i32_0 = arith.constant 0 : i32
    %c0_i32_1 = arith.constant 0 : i32
    return %c0_i32, %c0_i32_0 : i32, i32
  }
  func.func @transform_7(%arg0: i32) -> (i32, i32) {
    %c0_i32 = arith.constant 0 : i32
    %c0_i32_0 = arith.constant 0 : i32
    %c0_i32_1 = arith.constant 0 : i32
    return %c0_i32, %c0_i32_0 : i32, i32
  }
  func.func @transform_8(%arg0: i32) -> (i32, i32) {
    %c0_i32 = arith.constant 0 : i32
    %c0_i32_0 = arith.constant 0 : i32
    return %arg0, %c0_i32 : i32, i32
  }
}

</mosaic_0001>

<bundles_post_ra>
// kernel: tpu_custom_call.1
= control target key start
LH: loop header
LB: loop body
LE: loop exit
PB: predicated region body
PF: predicated region fallthrough
CT: control target
= control target key end

     0   :  { %s1652_s0 = inlined_call_operand.<no memory space> [shape: s32[1], index: 0, kind: input, shape index: {}]   ;;  %s1653_s1 = inlined_call_operand.hbm [shape: bf16[16,128], index: 1, kind: input, shape index: {}]   ;;  %s1654_s2 = inlined_call_operand.hbm [shape: bf16[128,128], index: 2, kind: input, shape index: {}]   ;;  %s1655_s3 = inlined_call_operand.vmem [shape: f32[1,128], index: 3, kind: input, shape index: {}]   ;;  %s1656_s4 = inlined_call_operand.hbm [shape: bf16[128,128], index: 4, kind: input, shape index: {}]   ;;  %s1657_s5 = inlined_call_operand.vmem [shape: f32[1,128], index: 5, kind: input, shape index: {}]   ;;  %s1658_s6 = inlined_call_operand.hbm [shape: bf16[128,128], index: 6, kind: input, shape index: {}]   ;;  %s1659_s7 = inlined_call_operand.vmem [shape: f32[1,128], index: 7, kind: input, shape index: {}]   ;;  %s1660_s8 = inlined_call_operand.hbm [shape: f32[16,128], index: 8, kind: output, shape index: {}]  }
   0x1   :  { %13 = sst [smem:[#allocation2]] %s1652_s0 }
   0x2   :  { %14 = vsyncpa [#allocation4], 0 }
   0x3   :  { %16 = vsyncpa [#allocation4 + $0x1], 0 }
   0x4   :  { %17 = vsyncpa [#allocation7], 0 }
   0x5   :  { %18 = vsyncpa [#allocation10], 0 }
   0x6   :  { %19 = vsyncpa [#allocation5], 0 }
   0x7   :  { %21 = vsyncpa [#allocation5 + $0x1], 0  ;;  %s1345_s29 = smov 0   ;;  %s1347_s30 = smov 0  }
   0x8   :  { %s1349_s9 = smov 0   ;;  %s1351_s10 = smov 0  }
   0x9 LB: > { %s1366_s0 = sadd.s32 4294967295, %s1286_s10   ;;  %s854_s11 = sadd.s32 4294967294, %s1286_s10   ;;  %s1286_s10 = sphi %s1351_s10, %s1686_s10   ;;  %s1282_s9 = sphi %s1349_s9, %s1685_s9   ;;  %s1278_s30 = sphi %s1347_s30, %s1684_s30   ;;  %s1274_s29 = sphi %s1345_s29, %s1683_s29  }
   0xa   : > { %p68_p0 = scmp.ne.s32.totalorder %s1278_s30, %s1274_s29  ;;  %p1661_p1 = scmp.eq.s32.totalorder %s1366_s0, 0 }
   0xb   : > { %p224_p3 = scmp.eq.s32.totalorder %s854_s11, 1  ;;  %p855_p5 = scmp.ge.s32.totalorder %s1286_s10, 1 }
   0xc   : > { %p1375_p4 = por %p1661_p1, %p68_p0  ;;  %p231_p7 = scmp.lt.s32.totalorder %s1286_s10, 3 }
   0xd   : > { %p1380_p6 = por %p224_p3, %p68_p0  ;;  %s1288_s15 = smov [#allocation6]  }
   0xe   : > { %s1665_s12 = scalar_select %p1375_p4, 1, 0 }
   0xf   : > { %s1666_s13 = scalar_select %p1380_p6, 1, 0 }
  0x10   : > { %p1385_p8 = pnand %p855_p5, %p231_p7  ;;  %s246_s16 = sshll.u32 %s1288_s15, 4  ;;  %s1389_s16 = int_to_ptr.vmem [resolvable:$true] %s246_s16 }
  0x11   : > { %1667 = sst [smem:[#allocation16_spill]] %s1666_s13  ;;  %s1289_s18 = smov [#allocation8]  }
  0x12   : > { %s1668_s14 = scalar_select %p1385_p8, 1, 0 }
  0x13   : > { %p1009_p9 = pneg %p1385_p8  ;;  %s262_s19 = sshll.u32 %s1289_s18, 4  ;;  %s1400_s19 = int_to_ptr.vmem [resolvable:$true] %s262_s19 }
  0x14   : > { %s1290_s20 = smov [#allocation9]   ;;  %s1098_s24 = scalar_lea.hbm %s1654_s2, 1024 }
  0x15   : > { %p1396_p11 = pnand %p1009_p9, %p1661_p1  ;;  %s1402_s21 = sshll.u32 %s1290_s20, 4  ;;  %s279_s21 = int_to_ptr.vmem [resolvable:$true] %s1402_s21 }
  0x16   : > { %p1099_p12 = scmp.ne.s32.totalorder %s1654_s2, %s1098_s24  ;;  %p1105_p5 = scmp.lt.u32.totalorder %s1098_s24, %s1654_s2 }
  0x17   : > { %p1412_p13 = pneg %p1396_p11 }
  0x19   : > { %p1101_p0 = pnand %p1412_p13, %p1099_p12 }
  0x1b   : > { %p1102_p3 = pneg %p1101_p0 }
  0x1d   : > { %p1107_p7 = pnand %p1105_p5, %p1102_p3 }
  0x1f   : > { %1110 = shalt.err (!%p1107_p7)
}
  0x20   : > { %s1111_s15 = scalar_lea.vmem %s1389_s16, 1024  ;;  %p1119_p2 = scmp.lt.s32.totalorder %s1389_s16, %s1389_s16 }
  0x21   : > { %p1112_p9 = scmp.ne.s32.totalorder %s1389_s16, %s1111_s15  ;;  %p1120_p6 = scmp.lt.s32.totalorder %s1111_s15, %s1111_s15 }
  0x23   : > { %p1114_p10 = pnand %p1112_p9, %p1412_p13  ;;  %p1121_p12 = por %p1120_p6, %p1119_p2 }
  0x25   : > { %p1115_p1 = pneg %p1114_p10 }
  0x27   : > { %p1122_p0 = pnand %p1121_p12, %p1115_p1 }
  0x29   : > { %1125 = shalt.err (!%p1122_p0)
}
  0x2a   : > { %s1291_s18 = smov 64   ;;  %s1292_s20 = smov 4  }
  0x2b   : > { %1012 = dma.hbm_to_vmem [thread:$0]  (!%p1396_p11), %s1654_s2, 1024, %s1389_s16, [#allocation7], %s1291_s18, %s1291_s18, %s1292_s20  }
  0x2c   : > { %s1126_s26 = scalar_lea.hbm %s1656_s4, 1024 }
  0x2d   : > { %p1127_p1 = scmp.ne.s32.totalorder %s1656_s4, %s1126_s26  ;;  %p1133_p10 = scmp.lt.u32.totalorder %s1126_s26, %s1656_s4 }
  0x2f   : > { %p1129_p2 = pnand %p1127_p1, %p1412_p13 }
  0x31   : > { %p1130_p6 = pneg %p1129_p2 }
  0x33   : > { %p1135_p3 = pnand %p1133_p10, %p1130_p6 }
  0x35   : > { %1138 = shalt.err (!%p1135_p3)
}
  0x36   : > { %s1139_s16 = scalar_lea.vmem %s1400_s19, 1024  ;;  %p1147_p12 = scmp.lt.s32.totalorder %s1400_s19, %s1400_s19 }
  0x37   : > { %p1140_p5 = scmp.ne.s32.totalorder %s1400_s19, %s1139_s16  ;;  %p1148_p0 = scmp.lt.s32.totalorder %s1139_s16, %s1139_s16 }
  0x39   : > { %p1142_p7 = pnand %p1140_p5, %p1412_p13  ;;  %p1149_p1 = por %p1148_p0, %p1147_p12 }
  0x3b   : > { %p1143_p9 = pneg %p1142_p7 }
  0x3d   : > { %p1150_p2 = pnand %p1149_p1, %p1143_p9 }
  0x3f   : > { %1153 = shalt.err (!%p1150_p2)
}
  0x40   : > { %1015 = dma.hbm_to_vmem [thread:$0]  (!%p1396_p11), %s1656_s4, 1024, %s1400_s19, [#allocation7], %s1291_s18, %s1291_s18, %s1292_s20  }
  0x41   : > { %s1154_s25 = scalar_lea.hbm %s1658_s6, 1024 }
  0x42   : > { %p1155_p6 = scmp.ne.s32.totalorder %s1658_s6, %s1154_s25  ;;  %p1161_p5 = scmp.lt.u32.totalorder %s1154_s25, %s1658_s6 }
  0x44   : > { %p1157_p10 = pnand %p1155_p6, %p1412_p13 }
  0x46   : > { %p1158_p3 = pneg %p1157_p10 }
  0x48   : > { %p1163_p7 = pnand %p1161_p5, %p1158_p3 }
  0x4a   : > { %1166 = shalt.err (!%p1163_p7)
}
  0x4b   : > { %s1167_s16 = scalar_lea.vmem %s279_s21, 1024  ;;  %p1175_p1 = scmp.lt.s32.totalorder %s279_s21, %s279_s21 }
  0x4c   : > { %p1168_p9 = scmp.ne.s32.totalorder %s279_s21, %s1167_s16  ;;  %p1176_p2 = scmp.lt.s32.totalorder %s1167_s16, %s1167_s16 }
  0x4e   : > { %p1170_p12 = pnand %p1168_p9, %p1412_p13  ;;  %p1177_p4 = por %p1176_p2, %p1175_p1 }
  0x50   : > { %p1171_p0 = pneg %p1170_p12 }
  0x52   : > { %p1178_p8 = pnand %p1177_p4, %p1171_p0 }
  0x54   : > { %1181 = shalt.err (!%p1178_p8)
}
  0x55   : > { %1018 = dma.hbm_to_vmem [thread:$0]  (!%p1396_p11), %s1658_s6, 1024, %s279_s21, [#allocation10], %s1291_s18, %s1291_s18, %s1292_s20  }
  0x56   : > { %s1485_s27 = sadd.s32 1, %s1286_s10   ;;  %s55_s22 = sadd.s32 1, %s1282_s9 }
  0x57   : > { %s52_s17 = ssub.s32 %s1286_s10, %s1485_s27  ;;  %p62_p8 = scmp.ne.s32.totalorder %s1282_s9, %s1278_s30 }
  0x58   : > { %p53_p4 = scmp.eq.s32.totalorder %s52_s17, 0  ;;  %p63_p13 = scmp.eq.s32.totalorder %s1286_s10, 0 }
  0x59   : > { %p1030_p6 = scmp.lt.s32.totalorder %s1286_s10, 2  ;;  %p1671_p3 = scmp.eq.s32.totalorder %s1366_s0, 1 }
  0x5a   : > { %s1495_s23 = scalar_select %p53_p4, %s1282_s9, %s55_s22  }
  0x5b   : > { %p64_p10 = por %p63_p13, %p62_p8  ;;  %p1499_p5 = por %p1671_p3, %p62_p8 }
  0x5c   : > { %s295_s25 = sand.u32 1, %s1282_s9   ;;  %s861_s26 = sshll.u32 %s1286_s10, 6 }
  0x5d   : > { %s860_s21 = sshll.u32 %s295_s25, 2  ;;  %s1508_s28 = scalar_lea.hbm %s1653_s1, %s861_s26 }
  0x5e   : > { %s299_s11 = scalar_lea.vmem [#allocation3], %s860_s21  ;;  %p1510_p11 = pnand %p1030_p6, %p64_p10 }
  0x5f   : > { %s306_s15 = sshll.u32 %s299_s11, 4  ;;  %s296_s19 = scalar_lea.sflag [#allocation4], %s295_s25  ;;  %s1514_s15 = int_to_ptr.vmem [resolvable:$true] %s306_s15 }
  0x60   : > { %s1182_s13 = scalar_lea.hbm %s1508_s28, 64  ;;  %p1184_p9 = pneg %p1510_p11 }
  0x61   : > { %p1183_p7 = scmp.ne.s32.totalorder %s1508_s28, %s1182_s13  ;;  %s1187_s26 = scalar_lea.hbm %s1653_s1, 128 }
  0x62   : > { %p1188_p1 = scmp.lt.u32.totalorder %s1508_s28, %s1653_s1  ;;  %p1189_p2 = scmp.lt.u32.totalorder %s1187_s26, %s1182_s13 }
  0x63   : > { %p1185_p12 = pnand %p1184_p9, %p1183_p7  ;;  %p1191_p8 = scmp.lt.u32.totalorder %s1182_s13, %s1508_s28 }
  0x64   : > { %p1190_p4 = por %p1189_p2, %p1188_p1 }
  0x65   : > { %p1186_p0 = pneg %p1185_p12 }
  0x66   : > { %p1192_p13 = por %p1191_p8, %p1190_p4 }
  0x68   : > { %p1193_p6 = pnand %p1192_p13, %p1186_p0 }
  0x6a   : > { %1196 = shalt.err (!%p1193_p6)
}
  0x6b   : > { %s1197_s25 = scalar_lea.vmem %s1514_s15, 64  ;;  %s1293_s20 = smov [#allocation3]  }
  0x6c   : > { %p1198_p10 = scmp.ne.s32.totalorder %s1514_s15, %s1197_s25  ;;  %s1202_s11 = sshll.u32 %s1293_s20, 4  ;;  %s1203_s11 = int_to_ptr.vmem [resolvable:$false] %s1202_s11 }
  0x6d   : > { %s1204_s17 = scalar_lea.vmem %s1203_s11, 128  ;;  %p1205_p12 = scmp.lt.s32.totalorder %s1514_s15, %s1203_s11 }
  0x6e   : > { %p1200_p3 = pnand %p1198_p10, %p1184_p9  ;;  %p1206_p1 = scmp.lt.s32.totalorder %s1204_s17, %s1197_s25 }
  0x70   : > { %p1201_p7 = pneg %p1200_p3  ;;  %p1207_p2 = por %p1206_p1, %p1205_p12 }
  0x72   : > { %p1208_p4 = pnand %p1207_p2, %p1201_p7 }
  0x74   : > { %1211 = shalt.err (!%p1208_p4)
}
  0x75   : > { %1022 = dma.hbm_to_vmem [thread:$0]  (!%p1510_p11), %s1508_s28, 64, %s1514_s15, %s296_s19  }
  0x76   : > { %p1674_p0 = scmp.ne.s32.totalorder %s1668_s14, 0 }
  0x77   : > { %s1544_s13 = sand.u32 (!%p1674_p0), 1, %s1278_s30   ;;  %p1675_p9 = scmp.ne.s32.totalorder (!%p1674_p0), %s1665_s12, 0 }
  0x78   : > { %315 = sbr.rel (%p1674_p0) target bundleno = 833 (0x341), region = 52  ;;  %s863_s22 = sshll.u32 (!%p1674_p0), %s1544_s13, 2 }
  0x79   : > { %s318_s26 = scalar_lea.sflag (!%p1674_p0), [#allocation4], %s1544_s13  ;;  %s1548_s21 = scalar_lea.vmem (!%p1674_p0), [#allocation3], %s863_s22 }
  0x7f   : > { %1257 = dma.done.wait (%p1675_p9), %s318_s26, 64  }
  0x80   : > { %1259 = vsyncadd (%p1675_p9), %s318_s26, 4294967232  ;;  %p1676_p11 = scmp.eq.s32.totalorder %s1366_s0, 0 }
  0x82   : > { %1261 = dma.done.wait (%p1676_p11), [#allocation7], 2048   ;;  %p1677_p8 = pmov %p1676_p11 }
  0x84   : > { %1263 = vsyncadd (%p1677_p8), [#allocation7], 4294965248  ;;  %p1678_p13 = pmov %p1677_p8 }
  0x85   : > { %p1679_p6 = pmov %p1677_p8 }
  0x86   : > { %1265 = dma.done.wait (%p1678_p13), [#allocation10], 1024  }
  0x87   : > { %1267 = vsyncadd (%p1679_p6), [#allocation10], 4294966272  ;;  %v1294_v0 = vmov 0.0   ;;  %vm1295_vm0 = vmmov 0   ;;  %v1074_v1 = vld [vmem:[#allocation6] sm:$0xff]   ;;  %v1075_v2 = vld [vmem:[#allocation6 + $0x8] sm:$0xff]   ;;  %v368_v24 = vlaneseq }
  0x88   : > { %933 = vmatprep.subr.bf16.mxu0 %v1294_v0  ;;  %949 = vmatprep.mubr.msk.bf16.mxu0 %vm1295_vm0, %v1294_v0  ;;  %v1076_v3 = vld [vmem:[#allocation6 + $0x10] sm:$0xff]   ;;  %v1082_v4 = vld [vmem:[#allocation8] sm:$0xff]   ;;  %v1077_v5 = vld [vmem:[#allocation6 + $0x18] sm:$0xff]   ;;  %s868_s12 = sshll.u32 %s1366_s0, 3  ;;  %s367_s14 = sld [smem:[#allocation2]] }
  0x89   : > { %953 = vmatprep.subr.bf16.mxu1 %v1294_v0  ;;  %969 = vmatprep.mubr.msk.bf16.mxu1 %vm1295_vm0, %v1294_v0  ;;  %v1083_v6 = vld [vmem:[#allocation8 + $0x8] sm:$0xff]   ;;  %v1078_v7 = vld [vmem:[#allocation6 + $0x20] sm:$0xff]   ;;  %v1084_v8 = vld [vmem:[#allocation8 + $0x10] sm:$0xff]   ;;  %v369_v25 = vshrl.u32 %v368_v24, 7  ;;  %v371_v26 = vstv %s868_s12  ;;  %v487_v28 = vand.u32 127, %v368_v24  ;;  %s867_s25 = sshll.u32 %s1544_s13, 3 }
  0x8a   : > { %934 = vmatpush3.bf16.msra.mxu0 %v1074_v1  ;;  %954 = vmatpush3.bf16.msra.mxu1 %v1082_v4  ;;  %v1079_v9 = vld [vmem:[#allocation6 + $0x28] sm:$0xff]   ;;  %v1085_v10 = vld [vmem:[#allocation8 + $0x18] sm:$0xff]   ;;  %v1080_v11 = vld [vmem:[#allocation6 + $0x30] sm:$0xff]   ;;  %s903_s17 = sshll.u32 %s1366_s0, 7  ;;  %s365_s22 = scalar_lea.vmem [#allocation11], %s867_s25 }
  0x8b   : > { %935 = vmatprep.subr.bf16.mxu0 %v1294_v0  ;;  %955 = vmatprep.subr.bf16.mxu1 %v1294_v0  ;;  %v1086_v12 = vld [vmem:[#allocation8 + $0x20] sm:$0xff]   ;;  %v1081_v13 = vld [vmem:[#allocation6 + $0x38] sm:$0xff]   ;;  %v1087_v14 = vld [vmem:[#allocation8 + $0x28] sm:$0xff]   ;;  %v372_v27 = vadd.s32 %v371_v26, %v369_v25  ;;  %s755_s26 = sshll.u32 %s365_s22, 4  ;;  %s1296_s15 = smov [#allocation11]   ;;  %s1610_s26 = int_to_ptr.vmem [resolvable:$true] %s755_s26 }
  0x8c   : > { %v373_v15 = vld [vmem:[%s1548_s21] sm:$0xf]  ;;  %v1088_v16 = vld [vmem:[#allocation8 + $0x30] sm:$0xff]   ;;  %v1090_v18 = vld [vmem:[#allocation9] sm:$0xff]   ;;  %s1212_s0 = scalar_lea.vmem %s1610_s26, 128  ;;  %s1216_s16 = sshll.u32 %s1296_s15, 4  ;;  %s1217_s16 = int_to_ptr.vmem [resolvable:$false] %s1216_s16 }
  0x8d   : > { %v1089_v17 = vld [vmem:[#allocation8 + $0x38] sm:$0xff]   ;;  %v1091_v19 = vld [vmem:[#allocation9 + $0x8] sm:$0xff]   ;;  %v1092_v20 = vld [vmem:[#allocation9 + $0x10] sm:$0xff]   ;;  %v488_v29 = vmul.u32 2654435761, %v372_v27  ;;  %p1213_p10 = scmp.ne.s32.totalorder %s1610_s26, %s1212_s0  ;;  %s1218_s19 = scalar_lea.vmem %s1217_s16, 256 }
  0x8e   : > { %936 = vmatpush3.bf16.msra.mxu0 %v1075_v2  ;;  %956 = vmatpush3.bf16.msra.mxu1 %v1083_v6  ;;  %v1093_v21 = vld [vmem:[#allocation9 + $0x18] sm:$0xff]   ;;  %v1094_v22 = vld [vmem:[#allocation9 + $0x20] sm:$0xff]   ;;  %v1095_v23 = vld [vmem:[#allocation9 + $0x28] sm:$0xff]   ;;  %s490_s28 = smul.u32 2246822507, %s367_s14  ;;  %s1608_s14 = scalar_lea.hbm %s1660_s8, %s903_s17 }
  0x8f   : > { %937 = vmatprep.subr.bf16.mxu0 %v1294_v0  ;;  %957 = vmatprep.subr.bf16.mxu1 %v1294_v0  ;;  %v489_v30 = vadd.s32 %v488_v29, %v487_v28  ;;  %v869_v42 = vld [vmem:[%s1655_s3] ss:$0 sm:$0xff]  ;;  %v1096_v50 = vld [vmem:[#allocation9 + $0x30] sm:$0xff]   ;;  %p1214_p3 = pnand %p1213_p10, %p1499_p5  ;;  %p1219_p12 = scmp.lt.s32.totalorder %s1610_s26, %s1217_s16 }
  0x90   : > { %v491_v31 = vstv %s490_s28  ;;  %v1097_v51 = vld [vmem:[#allocation9 + $0x38] sm:$0xff]   ;;  %s742_s28 = scalar_lea.sflag [#allocation5], %s1544_s13  ;;  %p1220_p1 = scmp.lt.s32.totalorder %s1218_s19, %s1212_s0 }
  0x91   : > { %v492_v32 = vadd.s32 %v491_v31, %v489_v30  ;;  %v878_v61 = vld [vmem:[%s1657_s5] ss:$0 sm:$0xff]  ;;  %p1215_p7 = pneg %p1214_p3 }
  0x92   : > { %938 = vmatpush3.bf16.msra.mxu0 %v1076_v3  ;;  %958 = vmatpush3.bf16.msra.mxu1 %v1084_v8  ;;  %p1221_p2 = por %p1220_p1, %p1219_p12 }
  0x93   : > { %939 = vmatprep.subr.bf16.mxu0 %v1294_v0  ;;  %959 = vmatprep.subr.bf16.mxu1 %v1294_v0  ;;  %v493_v33 = vadd.s32 3266489909, %v492_v32  ;;  %v617_v52 = vadd.s32 2238012522, %v492_v32 }
  0x94   : > { %p1222_p4 = pnand %p1221_p2, %p1215_p7 }
  0x95   : > { %v494_v34 = vshrl.u32 %v493_v33, 16  ;;  %v618_v53 = vshrl.u32 %v617_v52, 16 }
  0x96   : > { %940 = vmatpush3.bf16.msra.mxu0 %v1077_v5  ;;  %960 = vmatpush3.bf16.msra.mxu1 %v1085_v10  ;;  %v890_v5 = vld [vmem:[%s1659_s7] ss:$0 sm:$0xff] }
  0x97   : > { %941 = vmatprep.subr.bf16.mxu0 %v1294_v0  ;;  %961 = vmatprep.subr.bf16.mxu1 %v1294_v0  ;;  %v495_v35 = vxor.u32 %v494_v34, %v493_v33  ;;  %v619_v54 = vxor.u32 %v618_v53, %v617_v52 }
  0x99   : > { %v496_v36 = vmul.u32 2146121005, %v495_v35  ;;  %v620_v55 = vmul.u32 2146121005, %v619_v54 }
  0x9a   : > { %942 = vmatpush3.bf16.msra.mxu0 %v1078_v7  ;;  %962 = vmatpush3.bf16.msra.mxu1 %v1086_v12 }
  0x9b   : > { %943 = vmatprep.subr.bf16.mxu0 %v1294_v0  ;;  %963 = vmatprep.subr.bf16.mxu1 %v1294_v0  ;;  %v497_v37 = vshrl.u32 %v496_v36, 15  ;;  %v621_v56 = vshrl.u32 %v620_v55, 15 }
  0x9d   : > { %v498_v38 = vxor.u32 %v497_v37, %v496_v36  ;;  %v622_v57 = vxor.u32 %v621_v56, %v620_v55 }
  0x9e   : > { %944 = vmatpush3.bf16.msra.mxu0 %v1079_v9  ;;  %964 = vmatpush3.bf16.msra.mxu1 %v1087_v14 }
  0x9f   : > { %945 = vmatprep.subr.bf16.mxu0 %v1294_v0  ;;  %965 = vmatprep.subr.bf16.mxu1 %v1294_v0  ;;  %v499_v39 = vmul.u32 2221713035, %v498_v38  ;;  %v623_v58 = vmul.u32 2221713035, %v622_v57 }
  0xa1   : > { %v500_v40 = vshrl.u32 %v499_v39, 16  ;;  %v624_v59 = vshrl.u32 %v623_v58, 16 }
  0xa2   : > { %946 = vmatpush3.bf16.msra.mxu0 %v1080_v11  ;;  %966 = vmatpush3.bf16.msra.mxu1 %v1088_v16 }
  0xa3   : > { %947 = vmatprep.subr.bf16.mxu0 %v1294_v0  ;;  %967 = vmatprep.subr.bf16.mxu1 %v1294_v0  ;;  %v501_v41 = vxor.u32 %v500_v40, %v499_v39  ;;  %v625_v60 = vxor.u32 %v624_v59, %v623_v58 }
  0xa5   : > { %vm502_vm1 = vcmp.ge.u32.totalorder %v501_v41, 858993459  ;;  %vm626_vm3 = vcmp.ge.u32.totalorder %v625_v60, 2147483648 }
  0xa6   : > { %948 = vmatpush3.bf16.msra.mxu0 %v1081_v13  ;;  %968 = vmatpush3.bf16.msra.mxu1 %v1089_v17  ;;  %vm887_vm2 = vmpackc.low %vm502_vm1, %vm502_vm1 }
  0xa7   : > { %973 = vmatprep.subr.bf16.mxu0 %v1294_v0  ;;  %vm899_vm4 = vmpackc.low %vm626_vm3, %vm626_vm3 }
  0xa9   : > { %950 = vmatmul.mubr.bf16.vlgmr.msra.gmra.mrb[0].mxu0 %v373_v15 }
  0xaa   : > { %989 = vmatprep.mubr.msk.bf16.mxu0 %vm1295_vm0, %v1294_v0  ;;  %974 = vmatpush3.bf16.msra.mxu0 %v1090_v18 }
  0xab   : > { %975 = vmatprep.subr.bf16.mxu0 %v1294_v0 }
  0xae   : > { %976 = vmatpush3.bf16.msra.mxu0 %v1091_v19 }
  0xaf   : > { %977 = vmatprep.subr.bf16.mxu0 %v1294_v0 }
  0xb2   : > { %978 = vmatpush3.bf16.msra.mxu0 %v1092_v20 }
  0xb3   : > { %979 = vmatprep.subr.bf16.mxu0 %v1294_v0 }
  0xb6   : > { %980 = vmatpush3.bf16.msra.mxu0 %v1093_v21 }
  0xb7   : > { %981 = vmatprep.subr.bf16.mxu0 %v1294_v0 }
  0xba   : > { %982 = vmatpush3.bf16.msra.mxu0 %v1094_v22 }
  0xbb   : > { %983 = vmatprep.subr.bf16.mxu0 %v1294_v0 }
  0xbe   : > { %984 = vmatpush3.bf16.msra.mxu0 %v1095_v23 }
  0xbf   : > { %985 = vmatprep.subr.bf16.mxu0 %v1294_v0 }
  0xc2   : > { %986 = vmatpush3.bf16.msra.mxu0 %v1096_v50 }
  0xc3   : > { %987 = vmatprep.subr.bf16.mxu0 %v1294_v0 }
  0xc6   : > { %988 = vmatpush3.bf16.msra.mxu0 %v1097_v51 }
 0x17c   : > { %v479_v43 = vpop.f32.mrb[0].mxu0 }
 0x17d   : > { %v480_v44 = vadd.f32 %v869_v42, %v479_v43  ;;  %v951_v45 = vpop.f32.mrb[1].mxu0 }
 0x17e   : > { %v482_v46 = vpop.f32.mrb[2].mxu0 }
 0x17f   : > { %v485_v47 = vmax.f32 %v480_v44, 0.0  ;;  %v952_v48 = vpop.f32.mrb[3].mxu0 }
 0x181   : > { %v888_v49 = vpack.c.bf16 %v485_v47, %v485_v47 }
 0x183   : > { %970 = vmatmul.mubr.msk.bf16.vlgmr.msra.gmra.mrb[0].mxu1 %vm887_vm2, %v888_v49 }
 0x256   : > { %v610_v62 = vpop.f32.mrb[0].mxu1 }
 0x257   : > { %v611_v63 = vadd.f32 %v878_v61, %v610_v62  ;;  %v971_v0 = vpop.f32.mrb[1].mxu1 }
 0x258   : > { %v613_v1 = vpop.f32.mrb[2].mxu1 }
 0x259   : > { %v616_v2 = vmax.f32 %v611_v63, 0.0  ;;  %v972_v3 = vpop.f32.mrb[3].mxu1 }
 0x25b   : > { %v900_v4 = vpack.c.bf16 %v616_v2, %v616_v2 }
 0x25d   : > { %990 = vmatmul.mubr.msk.bf16.vlgmr.msra.gmra.mrb[4].mxu0 %vm899_vm4, %v900_v4 }
 0x330   : > { %v734_v6 = vpop.f32.mrb[4].mxu0 }
 0x331   : > { %v735_v7 = vadd.f32 %v890_v5, %v734_v6  ;;  %v991_v8 = vpop.f32.mrb[5].mxu0 }
 0x332   : > { %v737_v9 = vpop.f32.mrb[6].mxu0 }
 0x333   : > { %740 = vst [vmem:[%s365_s22] sm:$0xff] %v735_v7  ;;  %v992_v10 = vpop.f32.mrb[7].mxu0 }
 0x334   : > { %1225 = shalt.err (!%p1222_p4)
}
 0x335   : > { %s1226_s13 = scalar_lea.hbm %s1608_s14, 128  ;;  %s1230_s20 = scalar_lea.hbm %s1660_s8, 256 }
 0x336   : > { %p1227_p0 = scmp.ne.s32.totalorder %s1608_s14, %s1226_s13  ;;  %p1231_p8 = scmp.lt.u32.totalorder %s1608_s14, %s1660_s8 }
 0x337   : > { %p1232_p13 = scmp.lt.u32.totalorder %s1230_s20, %s1226_s13  ;;  %p1234_p10 = scmp.lt.u32.totalorder %s1226_s13, %s1608_s14 }
 0x338   : > { %p1228_p9 = pnand %p1227_p0, %p1499_p5 }
 0x339   : > { %p1233_p6 = por %p1232_p13, %p1231_p8 }
 0x33a   : > { %p1229_p11 = pneg %p1228_p9 }
 0x33b   : > { %p1235_p3 = por %p1234_p10, %p1233_p6 }
 0x33d   : > { %p1236_p7 = pnand %p1235_p3, %p1229_p11 }
 0x33f   : > { %1239 = shalt.err (!%p1236_p7)
}
 0x340   : > { %1007 = dma.vmem_to_hbm [thread:$0]  (%p1499_p5), %s1610_s26, 128, %s1608_s14, %s742_s28  }
 0x341 PF: > { %s1680_s22 = sld [smem:[#allocation16_spill]]  ;;  %s767_s21 = sand.u32 1, %s1274_s29  }
 0x342   : > { %p1682_p1 = scmp.ge.s32.totalorder %s1286_s10, 2  ;;  %s768_s12 = scalar_lea.sflag [#allocation5], %s767_s21 }
 0x347   : > { %p1681_p12 = scmp.ne.s32.totalorder %s1680_s22, 0 }
 0x349   : > { %p1024_p2 = pnand %p1682_p1, %p1681_p12 }
 0x34b   : > { %1269 = dma.done.wait (!%p1024_p2), %s768_s12, 128  }
 0x34c   : > { %1271 = vsyncadd (!%p1024_p2), %s768_s12, 4294967168  ;;  %p24_p4 = scmp.ge.s32.totalorder %s1485_s27, 4   ;;  %s1683_s29 = smov %s1278_s30 }
 0x34d   : > { %s1684_s30 = smov %s1282_s9  ;;  %s1685_s9 = smov %s1495_s23 }
 0x34e   : > { %s1686_s10 = smov %s1485_s27  ;;  %26 = sbr.rel (!%p24_p4) target bundleno = 9 (0x9), region = 109 }
 0x355   :  { %773 = vsyncpa [#allocation4], 1 }
 0x356   :  { %775 = vsyncpa [#allocation4 + $0x1], 1 }
 0x357   :  { %776 = vsyncpa [#allocation7], 1 }
 0x358   :  { %777 = vsyncpa [#allocation10], 1 }
 0x359   :  { %778 = vsyncpa [#allocation5], 1 }
 0x35a   :  { %780 = vsyncpa [#allocation5 + $0x1], 1 }

</bundles_post_ra>
